<compile_context>
chip_gen: v7x
topology: tpu7x:2x2x1
jax: 0.10.0
libtpu: 0.0.40
codegen_flags: <defaults>
</compile_context>

<pallas_src>
import functools

import jax
import jax.numpy as jnp
from jax.experimental import pallas as pl
from jax.experimental.pallas import tpu as pltpu

BN_EPS = 1e-5


def _fused_kernel(x_ref, *refs, n_layers):
    # x_ref:  (1, Cin0, TILE_L)                 input tile (channels-first)
    # refs:   [w0, shift0, w1, shift1, ..., o_ref]
    #   w_i:     (Cout_i, Cin_i)   BN-scale already folded into rows
    #   shift_i: (Cout_i, 1)       folded conv-bias + BN shift
    # o_ref:  (1, Cout_last, TILE_L)
    o_ref = refs[-1]
    h = x_ref[0]  # (Cin0, TILE_L), f32
    for i in range(n_layers):
        w = refs[2 * i][...]          # (Cout, Cin)
        shift = refs[2 * i + 1][...]  # (Cout, 1), broadcasts over lanes
        h = jnp.dot(w, h, preferred_element_type=jnp.float32) + shift
        if i < n_layers - 1:
            h = jnp.maximum(h, 0.0)
        # TODO(synk): Dropout(0.5) is identity in eval mode; training-mode
        # dropout (pltpu.prng_random_bits mask) is not implemented.
    o_ref[0] = h.astype(o_ref.dtype)


def _pick_tile_l(L):
    for cand in (2048, 1024, 512, 256, 128):
        if L % cand == 0:
            return cand
    return L  # full-extent block (allowed when it equals the array dim)


def basic_conv1d_seq_forward(x_ncl, params):
    """x_ncl: (N, C_in, L) float32  ->  (N, C_out, L) float32."""
    N, C_in, L = x_ncl.shape
    n_layers = len(params)
    tile_l = _pick_tile_l(L)
    grid = (N, L // tile_l)

    inputs = [x_ncl]
    in_specs = [pl.BlockSpec((1, C_in, tile_l), lambda n, l: (n, 0, l))]

    for p in params:
        if p["has_bn"]:
            s = p["gamma"] / jnp.sqrt(p["rvar"] + BN_EPS)          # (Cout,)
            w = p["w"] * s[:, None]                                # fold scale
            shift = (p["b"] - p["rmean"]) * s + p["beta"]
        else:
            w = p["w"]
            shift = p["b"]
        cout, cin = w.shape
        inputs.append(w.astype(jnp.float32))
        inputs.append(shift.reshape(cout, 1).astype(jnp.float32))
        in_specs.append(pl.BlockSpec((cout, cin), lambda n, l: (0, 0)))
        in_specs.append(pl.BlockSpec((cout, 1), lambda n, l: (0, 0)))

    c_out = params[-1]["w"].shape[0]
    kernel = functools.partial(_fused_kernel, n_layers=n_layers)

    return pl.pallas_call(
        kernel,
        out_shape=jax.ShapeDtypeStruct((N, c_out, L), jnp.float32),
        grid=grid,
        in_specs=in_specs,
        out_specs=pl.BlockSpec((1, c_out, tile_l), lambda n, l: (n, 0, l)),
        compiler_params=pltpu.CompilerParams(
            dimension_semantics=("parallel", "parallel")),
    )(*inputs)


def init_params(channels, key):
    """Deterministic parameter init matching the module's shapes."""
    params = []
    n_layers = len(channels) - 1
    for i in range(n_layers):
        cin, cout = channels[i], channels[i + 1]
        key, kw, kb = jax.random.split(key, 3)
        bound = 1.0 / jnp.sqrt(cin)  # PyTorch default uniform bound
        w = jax.random.uniform(kw, (cout, cin), jnp.float32, -bound, bound)
        b = jax.random.uniform(kb, (cout,), jnp.float32, -bound, bound)
        has_bn = i < n_layers - 1
        if has_bn:
            gamma = jnp.ones((cout,), jnp.float32)
            beta = jnp.zeros((cout,), jnp.float32)
            rmean = jnp.zeros((cout,), jnp.float32)
            rvar = jnp.ones((cout,), jnp.float32)
        else:
            gamma = beta = rmean = rvar = None
        params.append(dict(w=w, b=b, gamma=gamma, beta=beta,
                           rmean=rmean, rvar=rvar, has_bn=has_bn))
    return params


def reference_forward(x_ncl, params):
    """Pure-JAX reference for a sanity check."""
    x = x_ncl
    n_layers = len(params)
    for i, p in enumerate(params):
        is_last = i == n_layers - 1
        y = jnp.einsum("oc,ncl->nol", p["w"], x) + p["b"][None, :, None]
        if p["has_bn"]:
            scale = p["gamma"] / jnp.sqrt(p["rvar"] + BN_EPS)
            y = (y - p["rmean"][None, :, None]) * scale[None, :, None] \
                + p["beta"][None, :, None]
        if not is_last:
            y = jnp.maximum(y, 0.0)
        x = y
    return x


if __name__ == "__main__":
    key = jax.random.PRNGKey(0)
    channels = [4, 32, 64, 16]        # channels[0]=in, channels[-1]=out
    N, L = 2, 256                     # small; grid = (2, 2) with TILE_L = 128

    kx, kp = jax.random.split(key)
    x = jax.random.normal(kx, (N, channels[0], L), jnp.float32)
    params = init_params(channels, kp)

    out = basic_conv1d_seq_forward(x, params)
    out = jax.block_until_ready(out)

    ref = reference_forward(x, params)
    assert out.shape == (N, channels[-1], L), out.shape
    assert jnp.allclose(out, ref, atol=1e-4, rtol=1e-4), \
        float(jnp.max(jnp.abs(out - ref)))

    print("KERNEL_OK")
</pallas_src>

<mosaic_0001>
module attributes {stable_mosaic.version = 11 : i64} {
  func.func @_fused_kernel(%arg0: i32, %arg1: i32, %arg2: memref<1x4x256xf32, #tpu.memory_space<vmem>>, %arg3: memref<32x4xf32, #tpu.memory_space<vmem>>, %arg4: memref<32x1xf32, #tpu.memory_space<vmem>>, %arg5: memref<64x32xf32, #tpu.memory_space<vmem>>, %arg6: memref<64x1xf32, #tpu.memory_space<vmem>>, %arg7: memref<16x64xf32, #tpu.memory_space<vmem>>, %arg8: memref<16x1xf32, #tpu.memory_space<vmem>>, %arg9: memref<1x16x256xf32, #tpu.memory_space<vmem>>) attributes {dimension_semantics = [#tpu.dimension_semantics<parallel>, #tpu.dimension_semantics<parallel>], iteration_bounds = array<i64: 2, 1>, scalar_prefetch = 0 : i64, scratch_operands = 0 : i64, tpu.core_type = #tpu.core_type<tc>, window_params = [{transform_indices = @transform_0, window_bounds = array<i64: 1, 4, 256>}, {pipeline_mode = #tpu.pipeline_mode<synchronous>, transform_indices = @transform_1, window_bounds = array<i64: 32, 4>}, {pipeline_mode = #tpu.pipeline_mode<synchronous>, transform_indices = @transform_2, window_bounds = array<i64: 32, 1>}, {pipeline_mode = #tpu.pipeline_mode<synchronous>, transform_indices = @transform_3, window_bounds = array<i64: 64, 32>}, {pipeline_mode = #tpu.pipeline_mode<synchronous>, transform_indices = @transform_4, window_bounds = array<i64: 64, 1>}, {pipeline_mode = #tpu.pipeline_mode<synchronous>, transform_indices = @transform_5, window_bounds = array<i64: 16, 64>}, {pipeline_mode = #tpu.pipeline_mode<synchronous>, transform_indices = @transform_6, window_bounds = array<i64: 16, 1>}, {transform_indices = @transform_7, window_bounds = array<i64: 1, 16, 256>}]} {
    %c0 = arith.constant 0 : index
    %c0_0 = arith.constant 0 : index
    %c0_1 = arith.constant 0 : index
    %0 = vector.load %arg2[%c0, %c0_0, %c0_1] : memref<1x4x256xf32, #tpu.memory_space<vmem>>, vector<1x4x256xf32>
    %1 = vector.shape_cast %0 : vector<1x4x256xf32> to vector<4x256xf32>
    %c0_2 = arith.constant 0 : index
    %c0_3 = arith.constant 0 : index
    %2 = vector.load %arg3[%c0_2, %c0_3] : memref<32x4xf32, #tpu.memory_space<vmem>>, vector<32x4xf32>
    %c0_4 = arith.constant 0 : index
    %c0_5 = arith.constant 0 : index
    %3 = vector.load %arg4[%c0_4, %c0_5] : memref<32x1xf32, #tpu.memory_space<vmem>>, vector<32x1xf32>
    %cst = arith.constant dense<0.000000e+00> : vector<32x256xf32>
    %4 = tpu.matmul %2, %1, %cst {dimension_numbers = #tpu.dot_dimension_numbers<[1], [0], [0], [1], [0, 0, 1, 1], [], []>} : vector<32x4xf32>, vector<4x256xf32>, vector<32x256xf32> -> vector<32x256xf32>
    %5 = vector.broadcast %3 : vector<32x1xf32> to vector<32x256xf32>
    %6 = arith.addf %4, %5 : vector<32x256xf32>
    %cst_6 = arith.constant 0.000000e+00 : f32
    %7 = vector.broadcast %cst_6 : f32 to vector<32x256xf32>
    %8 = arith.maximumf %6, %7 : vector<32x256xf32>
    %c0_7 = arith.constant 0 : index
    %c0_8 = arith.constant 0 : index
    %9 = vector.load %arg5[%c0_7, %c0_8] : memref<64x32xf32, #tpu.memory_space<vmem>>, vector<64x32xf32>
    %c0_9 = arith.constant 0 : index
    %c0_10 = arith.constant 0 : index
    %10 = vector.load %arg6[%c0_9, %c0_10] : memref<64x1xf32, #tpu.memory_space<vmem>>, vector<64x1xf32>
    %cst_11 = arith.constant dense<0.000000e+00> : vector<64x256xf32>
    %11 = tpu.matmul %9, %8, %cst_11 {dimension_numbers = #tpu.dot_dimension_numbers<[1], [0], [0], [1], [0, 0, 1, 1], [], []>} : vector<64x32xf32>, vector<32x256xf32>, vector<64x256xf32> -> vector<64x256xf32>
    %12 = vector.broadcast %10 : vector<64x1xf32> to vector<64x256xf32>
    %13 = arith.addf %11, %12 : vector<64x256xf32>
    %cst_12 = arith.constant 0.000000e+00 : f32
    %14 = vector.broadcast %cst_12 : f32 to vector<64x256xf32>
    %15 = arith.maximumf %13, %14 : vector<64x256xf32>
    %c0_13 = arith.constant 0 : index
    %c0_14 = arith.constant 0 : index
    %16 = vector.load %arg7[%c0_13, %c0_14] : memref<16x64xf32, #tpu.memory_space<vmem>>, vector<16x64xf32>
    %c0_15 = arith.constant 0 : index
    %c0_16 = arith.constant 0 : index
    %17 = vector.load %arg8[%c0_15, %c0_16] : memref<16x1xf32, #tpu.memory_space<vmem>>, vector<16x1xf32>
    %cst_17 = arith.constant dense<0.000000e+00> : vector<16x256xf32>
    %18 = tpu.matmul %16, %15, %cst_17 {dimension_numbers = #tpu.dot_dimension_numbers<[1], [0], [0], [1], [0, 0, 1, 1], [], []>} : vector<16x64xf32>, vector<64x256xf32>, vector<16x256xf32> -> vector<16x256xf32>
    %19 = vector.broadcast %17 : vector<16x1xf32> to vector<16x256xf32>
    %20 = arith.addf %18, %19 : vector<16x256xf32>
    %c0_18 = arith.constant 0 : index
    %c0_19 = arith.constant 0 : index
    %c0_20 = arith.constant 0 : index
    %21 = vector.load %arg9[%c0_18, %c0_19, %c0_20] : memref<1x16x256xf32, #tpu.memory_space<vmem>>, vector<1x16x256xf32>
    %22 = vector.shape_cast %21 : vector<1x16x256xf32> to vector<16x256xf32>
    %23 = vector.shape_cast %20 : vector<16x256xf32> to vector<1x16x256xf32>
    tpu.vector_store %arg9[%c0_18, %c0_19, %c0_20], %23 {strides = array<i32>} : memref<1x16x256xf32, #tpu.memory_space<vmem>>, vector<1x16x256xf32>,
    return
  }
  func.func @transform_0(%arg0: i32, %arg1: i32) -> (i32, i32, i32) {
    %c0_i32 = arith.constant 0 : i32
    %c0_i32_0 = arith.constant 0 : i32
    return %arg0, %c0_i32, %arg1 : i32, i32, i32
  }
  func.func @transform_1(%arg0: i32, %arg1: i32) -> (i32, i32) {
    %c0_i32 = arith.constant 0 : i32
    %c0_i32_0 = arith.constant 0 : i32
    %c0_i32_1 = arith.constant 0 : i32
    return %c0_i32, %c0_i32_0 : i32, i32
  }
  func.func @transform_2(%arg0: i32, %arg1: i32) -> (i32, i32) {
    %c0_i32 = arith.constant 0 : i32
    %c0_i32_0 = arith.constant 0 : i32
    %c0_i32_1 = arith.constant 0 : i32
    return %c0_i32, %c0_i32_0 : i32, i32
  }
  func.func @transform_3(%arg0: i32, %arg1: i32) -> (i32, i32) {
    %c0_i32 = arith.constant 0 : i32
    %c0_i32_0 = arith.constant 0 : i32
    %c0_i32_1 = arith.constant 0 : i32
    return %c0_i32, %c0_i32_0 : i32, i32
  }
  func.func @transform_4(%arg0: i32, %arg1: i32) -> (i32, i32) {
    %c0_i32 = arith.constant 0 : i32
    %c0_i32_0 = arith.constant 0 : i32
    %c0_i32_1 = arith.constant 0 : i32
    return %c0_i32, %c0_i32_0 : i32, i32
  }
  func.func @transform_5(%arg0: i32, %arg1: i32) -> (i32, i32) {
    %c0_i32 = arith.constant 0 : i32
    %c0_i32_0 = arith.constant 0 : i32
    %c0_i32_1 = arith.constant 0 : i32
    return %c0_i32, %c0_i32_0 : i32, i32
  }
  func.func @transform_6(%arg0: i32, %arg1: i32) -> (i32, i32) {
    %c0_i32 = arith.constant 0 : i32
    %c0_i32_0 = arith.constant 0 : i32
    %c0_i32_1 = arith.constant 0 : i32
    return %c0_i32, %c0_i32_0 : i32, i32
  }
  func.func @transform_7(%arg0: i32, %arg1: i32) -> (i32, i32, i32) {
    %c0_i32 = arith.constant 0 : i32
    %c0_i32_0 = arith.constant 0 : i32
    return %arg0, %c0_i32, %arg1 : i32, i32, i32
  }
}

</mosaic_0001>

<bundles_post_ra>
// kernel: tpu_custom_call.1
= control target key start
LH: loop header
LB: loop body
LE: loop exit
PB: predicated region body
PF: predicated region fallthrough
CT: control target
= control target key end

     0   :  { %12 = vsyncpa [#allocation3], 0  ;;  %s1328_s0 = inlined_call_operand.vmem [shape: f32[2,4,256], index: 0, kind: input, shape index: {}]   ;;  %s1329_s1 = inlined_call_operand.vmem [shape: f32[32,4], index: 1, kind: input, shape index: {}]   ;;  %s1330_s2 = inlined_call_operand.vmem [shape: f32[32,1], index: 2, kind: input, shape index: {}]   ;;  %s1331_s3 = inlined_call_operand.vmem [shape: f32[64,32], index: 3, kind: input, shape index: {}]   ;;  %s1332_s4 = inlined_call_operand.vmem [shape: f32[64,1], index: 4, kind: input, shape index: {}]   ;;  %s1333_s5 = inlined_call_operand.vmem [shape: f32[16,64], index: 5, kind: input, shape index: {}]   ;;  %s1334_s6 = inlined_call_operand.vmem [shape: f32[16,1], index: 6, kind: input, shape index: {}]   ;;  %s1335_s7 = inlined_call_operand.hbm [shape: f32[2,16,256], index: 7, kind: output, shape index: {}]  }
   0x1   :  { %14 = vsyncpa [#allocation3 + $0x1], 0  ;;  %s1103_s24 = smov 0   ;;  %s1105_s25 = smov 0  }
   0x2   :  { %s1107_s26 = smov 0   ;;  %s1109_s27 = smov 0  }
   0x3   :  { %s1111_s28 = smov 0   ;;  %s1113_s29 = smov 0  }
   0x4 LB: > { %s861_s30 = sadd.s32 4294967295, %s1056_s29   ;;  %s862_s8 = sadd.s32 4294967294, %s1056_s29   ;;  %s1056_s29 = sphi %s1113_s29, %s20_s29   ;;  %s1052_s28 = sphi %s1111_s28, %s1342_s28   ;;  %s1048_s27 = sphi %s1109_s27, %s1341_s27   ;;  %s1044_s26 = sphi %s1107_s26, %s1340_s26   ;;  %s1040_s25 = sphi %s1105_s25, %s1339_s25   ;;  %s1036_s24 = sphi %s1103_s24, %s1338_s24  }
   0x5   : > { %s32_s9 = sadd.s32 1, %s1052_s28  ;;  %s195_s10 = sadd.s32 1, %s1044_s26 }
   0x6   : > { %p34_p0 = scmp.ge.s32.totalorder %s32_s9, 2  ;;  %p205_p1 = scmp.ne.s32.totalorder %s1044_s26, %s1040_s25 }
   0x7   : > { %p206_p2 = scmp.eq.s32.totalorder %s861_s30, 1  ;;  %p211_p3 = scmp.ne.s32.totalorder %s1040_s25, %s1036_s24 }
   0x8   : > { %s1344_s9 = smov (%p34_p0, %s32_s9), 0  ;;  %p212_p5 = scmp.eq.s32.totalorder %s862_s8, 1 }
   0x9   : > { %p1143_p4 = por %p206_p2, %p205_p1  ;;  %s190_s12 = ssub.s32 %s1052_s28, %s1344_s9 }
   0xa   : > { %p865_p6 = scmp.ge.s32.totalorder %s1056_s29, 1  ;;  %p193_p7 = scmp.eq.s32.totalorder %s190_s12, 0 }
   0xb   : > { %p1150_p8 = por %p212_p5, %p211_p3  ;;  %p261_p9 = scmp.lt.s32.totalorder %s1056_s29, 3 }
   0xc   : > { %s1156_s14 = scalar_select %p193_p7, %s1044_s26, %s195_s10  }
   0xd   : > { %p262_p10 = pnand %p865_p6, %p261_p9 }
   0xe   : > { %p298_p11 = scmp.lt.s32.totalorder (!%p262_p10), %s1048_s27, 1  ;;  %v1058_v0 = vmov (!%p262_p10), 0.0   ;;  %v313_v1 = vld [vmem:[%s1330_s2] sm:$0xff] (!%p262_p10)  ;;  %v1059_v2 = vmov (!%p262_p10), 0   ;;  %v315_v3 = vld [vmem:[%s1330_s2 + $0x10] sm:$0xff] (!%p262_p10)  ;;  %v314_v4 = vld [vmem:[%s1330_s2 + $0x8] sm:$0xff] (!%p262_p10) }
   0xf   : > { %265 = sbr.rel (%p262_p10) target bundleno = 751 (0x2ef), region = 48  ;;  %421 = vmatprep.mubr.f32.mxu0 (!%p262_p10), %v1058_v0  ;;  %599 = vmatprep.mubr.f32.mxu1 (!%p262_p10), %v1058_v0  ;;  %v316_v5 = vld [vmem:[%s1330_s2 + $0x18] sm:$0xff] (!%p262_p10)  ;;  %vm352_vm0 = vcmask (!%p262_p10), 1043456   ;;  %v309_v8 = vld [vmem:[%s1329_s1] sm:$0xff] (!%p262_p10)  ;;  %vm339_vm1 = vcmask (!%p262_p10), 31744   ;;  %v463_v10 = vld [vmem:[%s1332_s4 + $0x8] sm:$0xff] (!%p262_p10) }
  0x10   : > { %975 = vset.pattern.permute.xlu0 (!%p262_p10), %v1059_v2  ;;  %976 = vset.pattern.permute.xlu1 (!%p262_p10), %v1059_v2  ;;  %v462_v9 = vld [vmem:[%s1332_s4] sm:$0xff] (!%p262_p10)  ;;  %v310_v11 = vld [vmem:[%s1329_s1 + $0x8] sm:$0xff] (!%p262_p10)  ;;  %v464_v12 = vld [vmem:[%s1332_s4 + $0x10] sm:$0xff] (!%p262_p10)  ;;  %vm510_vm2 = vcmask (!%p262_p10), 261120   ;;  %vm678_vm3 = vcmask (!%p262_p10), 523264   ;;  %s294_s30 = sand.u32 (!%p262_p10), 1, %s1040_s25  }
  0x11   : > { %319 = vperm.xlu0 (!%p262_p10), %975, %v313_v1   ;;  %329 = vperm.xlu1 (!%p262_p10), %976, %v315_v3   ;;  %v465_v13 = vld [vmem:[%s1332_s4 + $0x18] sm:$0xff] (!%p262_p10)  ;;  %v311_v14 = vld [vmem:[%s1329_s1 + $0x10] sm:$0xff] (!%p262_p10)  ;;  %v466_v15 = vld [vmem:[%s1332_s4 + $0x20] sm:$0xff] (!%p262_p10)  ;;  %s866_s8 = sshll.u32 (!%p262_p10), %s294_s30, 5  ;;  %s891_s15 = sshll.u32 (!%p262_p10), %s1048_s27, 9 }
  0x12   : > { %v467_v16 = vld [vmem:[%s1332_s4 + $0x28] sm:$0xff] (!%p262_p10)  ;;  %v312_v17 = vld [vmem:[%s1329_s1 + $0x18] sm:$0xff] (!%p262_p10)  ;;  %v468_v18 = vld [vmem:[%s1332_s4 + $0x30] sm:$0xff] (!%p262_p10)  ;;  %s296_s10 = scalar_lea.vmem (!%p262_p10), [#allocation2], %s866_s8  ;;  %s1280_s18 = scalar_lea.hbm (!%p262_p10), %s1335_s7, %s891_s15 }
  0x13   : > { %v469_v19 = vld [vmem:[%s1332_s4 + $0x38] sm:$0xff] (!%p262_p10)  ;;  %v666_v20 = vld [vmem:[%s1334_s6] sm:$0xff] (!%p262_p10)  ;;  %v667_v21 = vld [vmem:[%s1334_s6 + $0x8] sm:$0xff] (!%p262_p10)  ;;  %s1060_s21 = smov (!%p262_p10), [#allocation2]  }
  0x14   : > { %v454_v54 = vld [vmem:[%s1331_s3] sm:$0xff] (!%p262_p10)  ;;  %v455_v55 = vld [vmem:[%s1331_s3 + $0x8] sm:$0xff] (!%p262_p10)  ;;  %v456_v56 = vld [vmem:[%s1331_s3 + $0x10] sm:$0xff] (!%p262_p10) }
  0x15   : > { %324 = vperm.xlu0 (!%p262_p10), %975, %v314_v4   ;;  %334 = vperm.xlu1 (!%p262_p10), %976, %v316_v5   ;;  %v457_v57 = vld [vmem:[%s1331_s3 + $0x18] sm:$0xff] (!%p262_p10)  ;;  %v458_v58 = vld [vmem:[%s1331_s3 + $0x20] sm:$0xff] (!%p262_p10)  ;;  %v459_v59 = vld [vmem:[%s1331_s3 + $0x28] sm:$0xff] (!%p262_p10) }
  0x16   : > { %s299_s17 = scalar_select %p298_p11, %s1048_s27, 1  ;;  %v460_v60 = vld [vmem:[%s1331_s3 + $0x30] sm:$0xff]  ;;  %v461_v61 = vld [vmem:[%s1331_s3 + $0x38] sm:$0xff] }
  0x17   : > { %s1282_s27 = scalar_lea.sflag [#allocation3], %s294_s30 }
  0x18   : > { %s890_s20 = sshll.u32 %s299_s17, 3 }
  0x19   : > { %s305_s12 = scalar_lea.vmem %s1328_s0, %s890_s20  ;;  %472 = vperm.xlu0 %975, %v462_v9   ;;  %477 = vperm.xlu1 %976, %v463_v10   ;;  %s982_s20 = sshll.u32 %s1060_s21, 4  ;;  %s983_s20 = int_to_ptr.vmem [resolvable:$false] %s982_s20 }
  0x1a   : > { %v308_v6 = vld [vmem:[%s305_s12] sm:$0xff]  ;;  %s782_s12 = sshll.u32 %s296_s10, 4  ;;  %s984_s22 = scalar_lea.vmem %s983_s20, 1024  ;;  %s1275_s12 = int_to_ptr.vmem [resolvable:$true] %s782_s12 }
  0x1b   : > { %v338_v7 = vcombine.high %v308_v6, %v308_v6  ;;  %s978_s19 = scalar_lea.vmem %s1275_s12, 512  ;;  %p985_p1 = scmp.lt.s32.totalorder %s1275_s12, %s983_s20 }
  0x1c   : > { %p979_p12 = scmp.ne.s32.totalorder %s1275_s12, %s978_s19  ;;  %p986_p2 = scmp.lt.s32.totalorder %s984_s22, %s978_s19 }
  0x1d   : > { %869 = vmatprep.subr.msk.mxu0 %vm352_vm0, %v338_v7  ;;  %482 = vperm.xlu0 %975, %v464_v12  }
  0x1e   : > { %870 = vmatpush1.msk.msra.mxu0 %vm352_vm0, %v308_v6  ;;  %487 = vperm.xlu1 %976, %v465_v13   ;;  %p980_p13 = pnand %p979_p12, %p1143_p4  ;;  %p987_p3 = por %p986_p2, %p985_p1 }
  0x1f   : > { %871 = vmatmul.mubr.msk.f32.vlgmr.msra.gmra.mrb[0].mxu0 %vm339_vm1, %v309_v8 }
  0x20   : > { %427 = vmatprep.mubr.f32.mxu0 %v1058_v0  ;;  %p981_p0 = pneg %p980_p13 }
  0x21   : > { %492 = vperm.xlu0 %975, %v466_v15  }
  0x22   : > { %497 = vperm.xlu1 %976, %v467_v16   ;;  %p988_p5 = pnand %p987_p3, %p981_p0 }
  0x23   : > { %872 = vmatmul.mubr.msk.f32.gmra.mrb[2].mxu0 %vm339_vm1, %v310_v11 }
  0x24   : > { %433 = vmatprep.mubr.f32.mxu0 %v1058_v0 }
  0x25   : > { %502 = vperm.xlu0 %975, %v468_v18  }
  0x26   : > { %507 = vperm.xlu1 %976, %v469_v19  }
  0x27   : > { %873 = vmatmul.mubr.msk.f32.gmra.mrb[4].mxu0 %vm339_vm1, %v311_v14 }
  0x28   : > { %439 = vmatprep.mubr.f32.mxu0 %v1058_v0 }
  0x29   : > { %670 = vperm.xlu0 %975, %v666_v20  }
  0x2a   : > { %675 = vperm.xlu1 %976, %v667_v21  }
  0x2b   : > { %874 = vmatmul.mubr.msk.f32.gmra.mrb[6].mxu0 %vm339_vm1, %v312_v17 }
  0x2c   : > { %749 = vmatprep.mubr.f32.mxu0 %v1058_v0 }
  0x90   : > { %v320_v22 = vpop.permute.xlu0 %319  ;;  %v330_v31 = vpop.permute.xlu1 %329 }
  0x94   : > { %v325_v26 = vpop.permute.xlu0 %324  ;;  %v335_v42 = vpop.permute.xlu1 %334 }
  0x98   : > { %v473_v1 = vpop.permute.xlu0 %472  ;;  %v478_v3 = vpop.permute.xlu1 %477 }
  0x9c   : > { %v483_v16 = vpop.permute.xlu0 %482 }
  0x9d   : > { %v488_v19 = vpop.permute.xlu1 %487 }
  0xf2   : > { %v423_v23 = vpop.f32.mrb[0].mxu0 }
  0xf3   : > { %v425_v24 = vpop.f32.mrb[1].mxu0  ;;  %v424_v25 = vadd.f32 %v423_v23, %v320_v22 }
  0xf4   : > { %v426_v27 = vadd.f32 %v425_v24, %v320_v22 }
  0xf5   : > { %v446_v33 = vmax.f32 %v424_v25, 0.0 }
  0xf6   : > { %v429_v28 = vpop.f32.mrb[2].mxu0  ;;  %v447_v35 = vmax.f32 %v426_v27, 0.0 }
  0xf7   : > { %v430_v29 = vadd.f32 %v429_v28, %v325_v26  ;;  %v431_v30 = vpop.f32.mrb[3].mxu0 }
  0xf8   : > { %v432_v32 = vadd.f32 %v431_v30, %v325_v26 }
  0xf9   : > { %v448_v34 = vmax.f32 %v430_v29, 0.0 }
  0xfa   : > { %v449_v36 = vmax.f32 %v432_v32, 0.0  ;;  %v435_v37 = vpop.f32.mrb[4].mxu0  ;;  %v493_v32 = vpop.permute.xlu0 %492 }
  0xfb   : > { %v437_v38 = vpop.f32.mrb[5].mxu0  ;;  %v894_v39 = vpack.c.bf16 %v448_v34, %v446_v33  ;;  %v436_v41 = vadd.f32 %v435_v37, %v330_v31 }
  0xfc   : > { %v892_v40 = vpack.c.bf16 %v449_v36, %v447_v35  ;;  %v438_v43 = vadd.f32 %v437_v38, %v330_v31  ;;  %v498_v35 = vpop.permute.xlu1 %497 }
  0xfd   : > { %v450_v48 = vmax.f32 %v436_v41, 0.0 }
  0xfe   : > { %v441_v44 = vpop.f32.mrb[6].mxu0  ;;  %893 = vmatprep.subr.bf16.mxu1 %v892_v40  ;;  %v451_v50 = vmax.f32 %v438_v43, 0.0 }
  0xff   : > { %v442_v45 = vadd.f32 %v441_v44, %v335_v42  ;;  %v443_v46 = vpop.f32.mrb[7].mxu0  ;;  %895 = vmatpush1.bf16.msra.mxu1 %v894_v39 }
 0x100   : > { %v444_v47 = vadd.f32 %v443_v46, %v335_v42 }
 0x101   : > { %v452_v49 = vmax.f32 %v442_v45, 0.0 }
 0x102   : > { %v453_v51 = vmax.f32 %v444_v47, 0.0 }
 0x103   : > { %v898_v52 = vpack.c.bf16 %v452_v49, %v450_v48  ;;  %v503_v48 = vpop.permute.xlu0 %502 }
 0x104   : > { %v896_v53 = vpack.c.bf16 %v453_v51, %v451_v50  ;;  %v508_v51 = vpop.permute.xlu1 %507 }
 0x106   : > { %897 = vmatprep.subr.bf16.mxu1 %v896_v53 }
 0x107   : > { %899 = vmatpush1.bf16.msra.mxu1 %v898_v52 }
 0x10a   : > { %875 = vmatmul.mubr.msk.f32.vlgmr.msra.gmra.mrb[0].mxu1 %vm510_vm2, %v454_v54 }
 0x10b   : > { %605 = vmatprep.mubr.f32.mxu1 %v1058_v0 }
 0x10e   : > { %876 = vmatmul.mubr.msk.f32.gmra.mrb[2].mxu1 %vm510_vm2, %v455_v55 }
 0x10f   : > { %611 = vmatprep.mubr.f32.mxu1 %v1058_v0 }
 0x112   : > { %877 = vmatmul.mubr.msk.f32.gmra.mrb[4].mxu1 %vm510_vm2, %v456_v56 }
 0x113   : > { %617 = vmatprep.mubr.f32.mxu1 %v1058_v0 }
 0x116   : > { %878 = vmatmul.mubr.msk.f32.gmra.mrb[6].mxu1 %vm510_vm2, %v457_v57 }
 0x117   : > { %623 = vmatprep.mubr.f32.mxu1 %v1058_v0 }
 0x11a   : > { %879 = vmatmul.mubr.msk.f32.gmra.mrb[8].mxu1 %vm510_vm2, %v458_v58 }
 0x11b   : > { %629 = vmatprep.mubr.f32.mxu1 %v1058_v0 }
 0x11e   : > { %880 = vmatmul.mubr.msk.f32.gmra.mrb[10].mxu1 %vm510_vm2, %v459_v59 }
 0x11f   : > { %635 = vmatprep.mubr.f32.mxu1 %v1058_v0 }
 0x122   : > { %881 = vmatmul.mubr.msk.f32.gmra.mrb[12].mxu1 %vm510_vm2, %v460_v60 }
 0x123   : > { %641 = vmatprep.mubr.f32.mxu1 %v1058_v0 }
 0x126   : > { %882 = vmatmul.mubr.msk.f32.gmra.mrb[14].mxu1 %vm510_vm2, %v461_v61 }
 0x1dd   : > { %v601_v62 = vpop.f32.mrb[0].mxu1 }
 0x1de   : > { %v603_v63 = vpop.f32.mrb[1].mxu1  ;;  %v602_v2 = vadd.f32 %v601_v62, %v473_v1 }
 0x1df   : > { %v604_v4 = vadd.f32 %v603_v63, %v473_v1  ;;  %v664_v63 = vld [vmem:[%s1333_s5] sm:$0xff]  ;;  %v665_v1 = vld [vmem:[%s1333_s5 + $0x8] sm:$0xff] }
 0x1e0   : > { %v648_v9 = vmax.f32 %v602_v2, 0.0  ;;  %v671_v2 = vpop.permute.xlu0 %670 }
 0x1e1   : > { %v607_v5 = vpop.f32.mrb[2].mxu1  ;;  %v649_v11 = vmax.f32 %v604_v4, 0.0 }
 0x1e2   : > { %v608_v6 = vadd.f32 %v607_v5, %v478_v3  ;;  %v609_v7 = vpop.f32.mrb[3].mxu1 }
 0x1e3   : > { %v610_v8 = vadd.f32 %v609_v7, %v478_v3  ;;  %v676_v7 = vpop.permute.xlu1 %675 }
 0x1e4   : > { %v650_v10 = vmax.f32 %v608_v6, 0.0 }
 0x1e5   : > { %v651_v12 = vmax.f32 %v610_v8, 0.0  ;;  %v613_v13 = vpop.f32.mrb[4].mxu1 }
 0x1e6   : > { %v902_v14 = vpack.c.bf16 %v650_v10, %v648_v9  ;;  %v615_v15 = vpop.f32.mrb[5].mxu1  ;;  %v614_v18 = vadd.f32 %v613_v13, %v483_v16 }
 0x1e7   : > { %v900_v17 = vpack.c.bf16 %v651_v12, %v649_v11  ;;  %v616_v20 = vadd.f32 %v615_v15, %v483_v16 }
 0x1e8   : > { %v652_v25 = vmax.f32 %v614_v18, 0.0 }
 0x1e9   : > { %v619_v21 = vpop.f32.mrb[6].mxu1  ;;  %901 = vmatprep.subr.bf16.mxu0 %v900_v17  ;;  %v653_v27 = vmax.f32 %v616_v20, 0.0 }
 0x1ea   : > { %v620_v22 = vadd.f32 %v619_v21, %v488_v19  ;;  %v621_v23 = vpop.f32.mrb[7].mxu1  ;;  %903 = vmatpush1.bf16.msra.mxu0 %v902_v14 }
 0x1eb   : > { %v622_v24 = vadd.f32 %v621_v23, %v488_v19 }
 0x1ec   : > { %v654_v26 = vmax.f32 %v620_v22, 0.0 }
 0x1ed   : > { %v655_v28 = vmax.f32 %v622_v24, 0.0  ;;  %v625_v29 = vpop.f32.mrb[8].mxu1 }
 0x1ee   : > { %v906_v30 = vpack.c.bf16 %v654_v26, %v652_v25  ;;  %v627_v31 = vpop.f32.mrb[9].mxu1  ;;  %v626_v34 = vadd.f32 %v625_v29, %v493_v32 }
 0x1ef   : > { %v904_v33 = vpack.c.bf16 %v655_v28, %v653_v27  ;;  %v628_v36 = vadd.f32 %v627_v31, %v493_v32 }
 0x1f0   : > { %v656_v41 = vmax.f32 %v626_v34, 0.0 }
 0x1f1   : > { %v631_v37 = vpop.f32.mrb[10].mxu1  ;;  %905 = vmatprep.subr.bf16.mxu0 %v904_v33  ;;  %v657_v43 = vmax.f32 %v628_v36, 0.0 }
 0x1f2   : > { %v632_v38 = vadd.f32 %v631_v37, %v498_v35  ;;  %v633_v39 = vpop.f32.mrb[11].mxu1  ;;  %907 = vmatpush1.bf16.msra.mxu0 %v906_v30 }
 0x1f3   : > { %v634_v40 = vadd.f32 %v633_v39, %v498_v35 }
 0x1f4   : > { %v658_v42 = vmax.f32 %v632_v38, 0.0 }
 0x1f5   : > { %v659_v44 = vmax.f32 %v634_v40, 0.0  ;;  %v637_v45 = vpop.f32.mrb[12].mxu1 }
 0x1f6   : > { %v910_v46 = vpack.c.bf16 %v658_v42, %v656_v41  ;;  %v639_v47 = vpop.f32.mrb[13].mxu1  ;;  %v638_v50 = vadd.f32 %v637_v45, %v503_v48 }
 0x1f7   : > { %v908_v49 = vpack.c.bf16 %v659_v44, %v657_v43  ;;  %v640_v52 = vadd.f32 %v639_v47, %v503_v48 }
 0x1f8   : > { %v660_v57 = vmax.f32 %v638_v50, 0.0 }
 0x1f9   : > { %v643_v53 = vpop.f32.mrb[14].mxu1  ;;  %909 = vmatprep.subr.bf16.mxu0 %v908_v49  ;;  %v661_v59 = vmax.f32 %v640_v52, 0.0 }
 0x1fa   : > { %v644_v54 = vadd.f32 %v643_v53, %v508_v51  ;;  %v645_v55 = vpop.f32.mrb[15].mxu1  ;;  %911 = vmatpush1.bf16.msra.mxu0 %v910_v46 }
 0x1fb   : > { %v646_v56 = vadd.f32 %v645_v55, %v508_v51 }
 0x1fc   : > { %v662_v58 = vmax.f32 %v644_v54, 0.0 }
 0x1fd   : > { %v663_v60 = vmax.f32 %v646_v56, 0.0 }
 0x1fe   : > { %v914_v61 = vpack.c.bf16 %v662_v58, %v660_v57 }
 0x1ff   : > { %v912_v62 = vpack.c.bf16 %v663_v60, %v661_v59 }
 0x201   : > { %913 = vmatprep.subr.bf16.mxu0 %v912_v62 }
 0x202   : > { %915 = vmatpush1.bf16.msra.mxu0 %v914_v61 }
 0x205   : > { %883 = vmatmul.mubr.msk.f32.vlgmr.msra.gmra.mrb[8].mxu0 %vm678_vm3, %v664_v63 }
 0x206   : > { %755 = vmatprep.mubr.f32.mxu0 %v1058_v0 }
 0x209   : > { %884 = vmatmul.mubr.msk.f32.gmra.mrb[10].mxu0 %vm678_vm3, %v665_v1 }
 0x2d8   : > { %v751_v3 = vpop.f32.mrb[8].mxu0 }
 0x2d9   : > { %v752_v4 = vadd.f32 %v751_v3, %v671_v2  ;;  %v753_v5 = vpop.f32.mrb[9].mxu0 }
 0x2da   : > { %v754_v6 = vadd.f32 %v753_v5, %v671_v2 }
 0x2db   : > { %762 = vst [vmem:[%s296_s10] sm:$0xff] %v752_v4 }
 0x2dc   : > { %763 = vst [vmem:[%s296_s10 + $0x8] sm:$0xff] %v754_v6  ;;  %v757_v0 = vpop.f32.mrb[10].mxu0 }
 0x2dd   : > { %v758_v8 = vadd.f32 %v757_v0, %v676_v7  ;;  %v759_v9 = vpop.f32.mrb[11].mxu0 }
 0x2de   : > { %v760_v10 = vadd.f32 %v759_v9, %v676_v7 }
 0x2df   : > { %764 = vst [vmem:[%s296_s10 + $0x10] sm:$0xff] %v758_v8 }
 0x2e0   : > { %765 = vst [vmem:[%s296_s10 + $0x18] sm:$0xff] %v760_v10 }
 0x2e1   : > { %991 = shalt.err (!%p988_p5)
}
 0x2e2   : > { %s992_s23 = scalar_lea.hbm %s1280_s18, 512  ;;  %s996_s10 = scalar_lea.hbm %s1335_s7, 1024 }
 0x2e3   : > { %p993_p6 = scmp.ne.s32.totalorder %s1280_s18, %s992_s23  ;;  %p997_p10 = scmp.lt.u32.totalorder %s1280_s18, %s1335_s7 }
 0x2e4   : > { %p998_p11 = scmp.lt.u32.totalorder %s996_s10, %s992_s23  ;;  %p1000_p13 = scmp.lt.u32.totalorder %s992_s23, %s1280_s18 }
 0x2e5   : > { %p994_p7 = pnand %p993_p6, %p1143_p4 }
 0x2e6   : > { %p999_p12 = por %p998_p11, %p997_p10 }
 0x2e7   : > { %p995_p9 = pneg %p994_p7 }
 0x2e8   : > { %p1001_p0 = por %p1000_p13, %p999_p12 }
 0x2ea   : > { %p1002_p1 = pnand %p1001_p0, %p995_p9 }
 0x2ec   : > { %1005 = shalt.err (!%p1002_p1)
}
 0x2ed   : > { %s1061_s17 = smov 256   ;;  %s1062_s19 = smov 16  }
 0x2ee   : > { %916 = dma.vmem_to_hbm [thread:$0]  (%p1143_p4), %s1275_s12, 512, %s1280_s18, %s1282_s27, %s1061_s17, %s1061_s17, %s1062_s19  }
 0x2ef PF: > { %p922_p2 = scmp.ge.s32.totalorder %s1056_s29, 2  ;;  %s797_s21 = sand.u32 1, %s1036_s24  }
 0x2f0   : > { %s798_s20 = scalar_lea.sflag [#allocation3], %s797_s21 }
 0x2f1   : > { %p919_p3 = pnand %p922_p2, %p1150_p8 }
 0x2f3   : > { %1031 = dma.done.wait (!%p919_p3), %s798_s20, 512  }
 0x2f4   : > { %1033 = vsyncadd (!%p919_p3), %s798_s20, 4294966784  ;;  %s20_s29 = sadd.s32 1, %s1056_s29   ;;  %s1338_s24 = smov %s1040_s25 }
 0x2f5   : > { %p17_p5 = scmp.ge.s32.totalorder %s20_s29, 4   ;;  %s1339_s25 = smov %s1044_s26 }
 0x2f6   : > { %s1340_s26 = smov %s1156_s14  ;;  %s1341_s27 = smov %s1052_s28 }
 0x2f7   : > { %s1342_s28 = smov %s1344_s9  ;;  %19 = sbr.rel (!%p17_p5) target bundleno = 4 (0x4), region = 83 }
 0x2fe   :  { %803 = vsyncpa [#allocation3], 1 }
 0x2ff   :  { %805 = vsyncpa [#allocation3 + $0x1], 1 }

</bundles_post_ra>
